<compile_context>
chip_gen: v7x
topology: tpu7x:2x2x1
jax: 0.10.0
libtpu: 0.0.40
codegen_flags: <defaults>
</compile_context>

<pallas_src>
import jax
import jax.numpy as jnp
from jax.experimental import pallas as pl
from jax.experimental.pallas import tpu as pltpu


# ----------------------------------------------------------------------------
# Kernel
# ----------------------------------------------------------------------------
def _discriminator_kernel(
    data_ref, neg_ref, negv_ref,             # batch-tiled activations
    w1a_ref, w1b_ref, b1_ref,                # dis[0] Linear(nb_item+neg_dis, 32), split
    w2r_ref, b2_ref,                         # dis[2] Linear(32, 1) as a (1, 32) row
    ws_ref, bs_ref,                          # std_vector Linear(neg_dis, vector_dim)
    wm_ref, bm_ref,                          # mean_vector Linear(neg_dis, vector_dim)
    wd_ref, bd_ref,                          # decoder Linear(vector_dim, nb_item)
    out_ref, pred_ref,
):
    data = data_ref[...]
    neg = neg_ref[...]
    negv = negv_ref[...]

    # fix_data = data + neg_distribution_data
    fix = data + neg

    # dis( cat([data, neg], -1) ) -- concat expressed as an exact split matmul:
    #   cat(x, y) @ W1 == x @ W1[:nb_item] + y @ W1[nb_item:]
    h = (
        jnp.dot(data, w1a_ref[...], preferred_element_type=jnp.float32)
        + jnp.dot(neg, w1b_ref[...], preferred_element_type=jnp.float32)
        + b1_ref[...]
    )
    h = jnp.maximum(h, 0.0)  # ReLU

    # Linear(32, 1): a 1-output-column MXU matmul wastes ~127/128 of the lanes;
    # per-lane multiply + cross-lane reduce on the VPU/XLU instead.
    logit = (
        jnp.sum(h * w2r_ref[...].astype(jnp.float32), axis=-1, keepdims=True)
        + b2_ref[...]
    )
    out_ref[...] = (1.0 / (1.0 + jnp.exp(-logit))).astype(out_ref.dtype)
    # TODO(synk): a lane-dense (1, tb) logit store would avoid the masked
    # last-dim-1 writes (mainly a v5e concern); skipped -- it needs an
    # in-kernel transpose and the pred writeback dominates.

    # z = exp(std_vector(fix)) * neg_distribution_vector + mean_vector(fix)
    # Two separate matmuls: keeps the std/mean split lane-aligned for any
    # vector_dim (a fused [ws|wm] slice at an unaligned column is not free).
    std = jnp.dot(fix, ws_ref[...], preferred_element_type=jnp.float32) + bs_ref[...]
    mean = jnp.dot(fix, wm_ref[...], preferred_element_type=jnp.float32) + bm_ref[...]
    z = jnp.exp(std) * negv.astype(jnp.float32) + mean

    # neg_distribution_pred = decoder(z)
    pred = (
        jnp.dot(z.astype(wd_ref.dtype), wd_ref[...], preferred_element_type=jnp.float32)
        + bd_ref[...]
    )
    pred_ref[...] = pred.astype(pred_ref.dtype)


# ----------------------------------------------------------------------------
# Tiling / VMEM budgeting helpers
# ----------------------------------------------------------------------------
def _round_up(x, m):
    return ((x + m - 1) // m) * m


def _sublane(dtype):
    # 8 sublanes of 32-bit; sub-32-bit dtypes pack along the sublane axis.
    return max(8, 32 // jnp.dtype(dtype).itemsize)


def _vmem_capacity_bytes():
    try:
        return int(pltpu.get_tpu_info().vmem_capacity_bytes)
    except Exception:
        return 64 * 1024 * 1024  # conservative (v7x per-TensorCore VMEM)


def _vmem_bytes(tb, nb_item, neg_dis, vector_dim, act_isz, w_isz, hidden=32):
    """Rough VMEM footprint for one grid step."""
    # Batch-tiled inputs + outputs, double-buffered by the pipeline.
    acts = 2 * tb * (nb_item + neg_dis + vector_dim) * act_isz
    outs = 2 * tb * (nb_item + 1) * act_isz
    # Resident weight blocks: Pallas still allocates pipeline buffers even for
    # constant-index_map inputs, so count them twice.
    weights = 2 * w_isz * (
        nb_item * hidden + neg_dis * hidden + hidden      # w1a, w1b, b1
        + hidden + 1                                      # w2 row, b2
        + 2 * (neg_dis * vector_dim + vector_dim)         # ws/bs, wm/bm
        + vector_dim * nb_item + nb_item                  # wd, bd
    )
    interm = 4 * tb * (hidden + 3 * vector_dim + nb_item)  # f32 intermediates
    return acts + outs + weights + interm


def _pick_batch_tile(block_b, batch, nb_item, neg_dis, vector_dim,
                     act_isz, w_isz, sub, target):
    tb = min(_round_up(block_b, sub), _round_up(batch, sub))
    # Keep >= 2 grid steps (when the batch allows) so megacore "parallel"
    # sharding has something to split on v7x; costs one ~0.35 us step elsewhere.
    if batch >= 2 * sub:
        tb = min(tb, _round_up(pl.cdiv(batch, 2), sub))
    # Shrink down to the sublane multiple if the footprint exceeds the budget
    # (no hard 512-row floor: wide feature dims must not blow VMEM).
    while tb > sub and _vmem_bytes(tb, nb_item, neg_dis, vector_dim,
                                   act_isz, w_isz) > target:
        tb = max(sub, _round_up(tb // 2, sub))
    return tb


# ----------------------------------------------------------------------------
# Wrapper
# ----------------------------------------------------------------------------
def discriminator_forward(data, neg_data, neg_vector, params, *,
                          block_b=512, io_dtype=jnp.bfloat16):
    """params: pre-packed weights, see pack_params(). Returns (out, pred).

    io_dtype: activation dtype inside the kernel (default bf16 -- the kernel is
    HBM-bound, so halving activation/pred bytes is ~the whole win). Pass
    io_dtype=None to keep the caller's dtype; pass bf16 arrays directly to
    avoid the conversion pass.
    """
    B, nb_item = data.shape
    neg_dis_size = neg_data.shape[1]
    vector_dim = neg_vector.shape[1]
    assert nb_item == neg_dis_size, (
        "Discriminator.forward requires nb_item == neg_dis_size "
        "(it computes data + neg_distribution_data and feeds it to "
        "Linear(neg_dis_size, ...))."
    )

    if io_dtype is not None:
        if data.dtype != io_dtype:
            data = data.astype(io_dtype)
        if neg_data.dtype != io_dtype:
            neg_data = neg_data.astype(io_dtype)
        if neg_vector.dtype != io_dtype:
            neg_vector = neg_vector.astype(io_dtype)
    act_dtype = data.dtype

    act_isz = jnp.dtype(act_dtype).itemsize
    w_isz = jnp.dtype(params["w1a"].dtype).itemsize
    sub = _sublane(act_dtype)

    cap = _vmem_capacity_bytes()
    target = int(0.75 * cap)          # ~48 MiB on v7x, ~96 MiB on v5e/v6e
    tb = _pick_batch_tile(block_b, B, nb_item, neg_dis_size, vector_dim,
                          act_isz, w_isz, sub, target)

    # No jnp.pad: Pallas masks the overhanging last batch block. All ops are
    # row-wise, so garbage in the padded rows never reaches real output rows.
    grid = (pl.cdiv(B, tb),)

    def batch_spec(feat):
        return pl.BlockSpec((tb, feat), lambda i: (i, 0))

    def resident_spec(a):
        # One block covering the whole array with a constant index_map: the
        # weight stays resident in VMEM across all batch tiles (no re-DMA).
        return pl.BlockSpec(a.shape, lambda i: (0, 0))

    weight_args = (
        params["w1a"], params["w1b"], params["b1"],
        params["w2r"], params["b2"],
        params["ws"], params["bs"],
        params["wm"], params["bm"],
        params["wd"], params["bd"],
    )

    out_shapes = (
        jax.ShapeDtypeStruct((B, 1), act_dtype),
        jax.ShapeDtypeStruct((B, nb_item), act_dtype),
    )
    out_specs = (
        pl.BlockSpec((tb, 1), lambda i: (i, 0)),
        pl.BlockSpec((tb, nb_item), lambda i: (i, 0)),
    )

    vmem_limit = min(
        max(int(1.5 * _vmem_bytes(tb, nb_item, neg_dis_size, vector_dim,
                                  act_isz, w_isz)),
            32 * 1024 * 1024),
        int(0.85 * cap),   # never request the whole physical VMEM (v7x headroom)
    )

    out, pred = pl.pallas_call(
        _discriminator_kernel,
        grid=grid,
        out_shape=out_shapes,
        in_specs=[batch_spec(nb_item), batch_spec(neg_dis_size), batch_spec(vector_dim)]
        + [resident_spec(a) for a in weight_args],
        out_specs=out_specs,
        compiler_params=pltpu.CompilerParams(
            dimension_semantics=("parallel",),   # megacore-shard the batch on v7x
            vmem_limit_bytes=vmem_limit,
        ),
    )(data, neg_data, neg_vector, *weight_args)

    return out, pred


# ----------------------------------------------------------------------------
# Parameters (mirror the PyTorch module's shapes; weights stored as (in, out))
# ----------------------------------------------------------------------------
def make_params(key, nb_item, neg_dis_size, vector_dim, hidden=32):
    """Raw (unfused) parameters — used by the pure-JAX reference."""
    ks = jax.random.split(key, 10)
    in1 = nb_item + neg_dis_size
    w1 = jax.random.uniform(ks[0], (in1, hidden), jnp.float32, -0.1, 0.1)
    return {
        "w1a": w1[:nb_item],                                        # (nb_item, 32)
        "w1b": w1[nb_item:],                                        # (neg_dis, 32)
        "b1": jax.random.uniform(ks[1], (1, hidden), jnp.float32, -0.1, 0.1),
        "w2": jax.random.uniform(ks[2], (hidden, 1), jnp.float32, -0.1, 0.1),
        "b2": jax.random.uniform(ks[3], (1, 1), jnp.float32, -0.1, 0.1),
        "ws": 0.01 * jax.random.normal(ks[4], (neg_dis_size, vector_dim), jnp.float32),
        "bs": jax.random.uniform(ks[5], (1, vector_dim), jnp.float32, -0.1, 0.1),
        "wm": 0.01 * jax.random.normal(ks[6], (neg_dis_size, vector_dim), jnp.float32),
        "bm": jax.random.uniform(ks[7], (1, vector_dim), jnp.float32, -0.1, 0.1),
        "wd": 0.01 * jax.random.normal(ks[8], (vector_dim, nb_item), jnp.float32),
        "bd": jax.random.uniform(ks[9], (1, nb_item), jnp.float32, -0.1, 0.1),
    }


def pack_params(p, dtype=None):
    """Kernel-side packing: w2 as a (1, 32) row; optional weight-matrix cast
    (biases stay f32 — they are added to the f32 accumulators)."""
    def cast(w):
        return w.astype(dtype) if dtype is not None else w
    return {
        "w1a": cast(p["w1a"]),
        "w1b": cast(p["w1b"]),
        "b1": p["b1"],
        "w2r": cast(p["w2"].T),                                     # (1, 32)
        "b2": p["b2"],
        "ws": cast(p["ws"]),
        "bs": p["bs"],
        "wm": cast(p["wm"]),
        "bm": p["bm"],
        "wd": cast(p["wd"]),
        "bd": p["bd"],
    }


def reference_forward(data, neg_data, neg_vector, p):
    fix = data + neg_data
    cat = jnp.concatenate([data, neg_data], axis=-1)
    w1 = jnp.concatenate([p["w1a"], p["w1b"]], axis=0)
    h = jnp.maximum(cat @ w1 + p["b1"], 0.0)
    out = jax.nn.sigmoid(h @ p["w2"] + p["b2"])
    z = jnp.exp(fix @ p["ws"] + p["bs"]) * neg_vector + (fix @ p["wm"] + p["bm"])
    pred = z @ p["wd"] + p["bd"]
    return out, pred


# ----------------------------------------------------------------------------
# Test
# ----------------------------------------------------------------------------
if __name__ == "__main__":
    # Small shapes consistent with the module (nb_item == neg_dis_size required
    # by `data + neg_distribution_data` followed by Linear(neg_dis_size, ...)).
    B, nb_item, neg_dis_size, vector_dim = 20, 16, 16, 8

    key = jax.random.PRNGKey(0)
    k_data, k_neg, k_vec, k_par = jax.random.split(key, 4)

    data = jax.random.normal(k_data, (B, nb_item), jnp.float32)
    neg_data = jax.random.normal(k_neg, (B, neg_dis_size), jnp.float32)
    neg_vector = jax.random.normal(k_vec, (B, vector_dim), jnp.float32)

    raw_params = make_params(k_par, nb_item, neg_dis_size, vector_dim)
    ref_out, ref_pred = reference_forward(data, neg_data, neg_vector, raw_params)

    # ---- f32 path (tight tolerance); block_b=8 exercises a multi-step grid
    # with an overhanging (masked) last batch block at these tiny shapes.
    params_f32 = pack_params(raw_params)
    out32, pred32 = discriminator_forward(
        data, neg_data, neg_vector, params_f32, block_b=8, io_dtype=jnp.float32
    )
    jax.block_until_ready((out32, pred32))
    assert out32.shape == (B, 1) and pred32.shape == (B, nb_item)
    assert jnp.allclose(out32, ref_out, atol=1e-4, rtol=1e-4)
    assert jnp.allclose(pred32, ref_pred, atol=1e-4, rtol=1e-4)

    # ---- bf16 I/O path (the production default; f32 accumulation on the MXU).
    params_bf16 = pack_params(raw_params, dtype=jnp.bfloat16)
    outb, predb = discriminator_forward(
        data, neg_data, neg_vector, params_bf16, block_b=8, io_dtype=jnp.bfloat16
    )
    jax.block_until_ready((outb, predb))
    assert outb.shape == (B, 1) and predb.shape == (B, nb_item)
    assert jnp.allclose(outb.astype(jnp.float32), ref_out, atol=2e-2, rtol=5e-2)
    assert jnp.allclose(predb.astype(jnp.float32), ref_pred, atol=2e-2, rtol=5e-2)

    print("KERNEL_OK")
</pallas_src>

<mosaic_0001>
module attributes {stable_mosaic.version = 11 : i64} {
  func.func @_discriminator_kernel(%arg0: i32, %arg1: memref<8x16xf32, #tpu.memory_space<vmem>>, %arg2: memref<8x16xf32, #tpu.memory_space<vmem>>, %arg3: memref<8x8xf32, #tpu.memory_space<vmem>>, %arg4: memref<16x32xf32, #tpu.memory_space<vmem>>, %arg5: memref<16x32xf32, #tpu.memory_space<vmem>>, %arg6: memref<1x32xf32, #tpu.memory_space<vmem>>, %arg7: memref<1x32xf32, #tpu.memory_space<vmem>>, %arg8: memref<1x1xf32, #tpu.memory_space<vmem>>, %arg9: memref<16x8xf32, #tpu.memory_space<vmem>>, %arg10: memref<1x8xf32, #tpu.memory_space<vmem>>, %arg11: memref<16x8xf32, #tpu.memory_space<vmem>>, %arg12: memref<1x8xf32, #tpu.memory_space<vmem>>, %arg13: memref<8x16xf32, #tpu.memory_space<vmem>>, %arg14: memref<1x16xf32, #tpu.memory_space<vmem>>, %arg15: memref<8x1xf32, #tpu.memory_space<vmem>>, %arg16: memref<8x16xf32, #tpu.memory_space<vmem>>) attributes {dimension_semantics = [#tpu.dimension_semantics<parallel>], iteration_bounds = array<i64: 3>, scalar_prefetch = 0 : i64, scratch_operands = 0 : i64, tpu.core_type = #tpu.core_type<tc>, window_params = [{transform_indices = @transform_0, window_bounds = array<i64: 8, 16>}, {transform_indices = @transform_1, window_bounds = array<i64: 8, 16>}, {transform_indices = @transform_2, window_bounds = array<i64: 8, 8>}, {pipeline_mode = #tpu.pipeline_mode<synchronous>, transform_indices = @transform_3, window_bounds = array<i64: 16, 32>}, {pipeline_mode = #tpu.pipeline_mode<synchronous>, transform_indices = @transform_4, window_bounds = array<i64: 16, 32>}, {pipeline_mode = #tpu.pipeline_mode<synchronous>, transform_indices = @transform_5, window_bounds = array<i64: 1, 32>}, {pipeline_mode = #tpu.pipeline_mode<synchronous>, transform_indices = @transform_6, window_bounds = array<i64: 1, 32>}, {pipeline_mode = #tpu.pipeline_mode<synchronous>, transform_indices = @transform_7, window_bounds = array<i64: 1, 1>}, {pipeline_mode = #tpu.pipeline_mode<synchronous>, transform_indices = @transform_8, window_bounds = array<i64: 16, 8>}, {pipeline_mode = #tpu.pipeline_mode<synchronous>, transform_indices = @transform_9, window_bounds = array<i64: 1, 8>}, {pipeline_mode = #tpu.pipeline_mode<synchronous>, transform_indices = @transform_10, window_bounds = array<i64: 16, 8>}, {pipeline_mode = #tpu.pipeline_mode<synchronous>, transform_indices = @transform_11, window_bounds = array<i64: 1, 8>}, {pipeline_mode = #tpu.pipeline_mode<synchronous>, transform_indices = @transform_12, window_bounds = array<i64: 8, 16>}, {pipeline_mode = #tpu.pipeline_mode<synchronous>, transform_indices = @transform_13, window_bounds = array<i64: 1, 16>}, {transform_indices = @transform_14, window_bounds = array<i64: 8, 1>}, {transform_indices = @transform_15, window_bounds = array<i64: 8, 16>}]} {
    %c0 = arith.constant 0 : index
    %c0_0 = arith.constant 0 : index
    %0 = vector.load %arg1[%c0, %c0_0] : memref<8x16xf32, #tpu.memory_space<vmem>>, vector<8x16xf32>
    %c0_1 = arith.constant 0 : index
    %c0_2 = arith.constant 0 : index
    %1 = vector.load %arg2[%c0_1, %c0_2] : memref<8x16xf32, #tpu.memory_space<vmem>>, vector<8x16xf32>
    %c0_3 = arith.constant 0 : index
    %c0_4 = arith.constant 0 : index
    %2 = vector.load %arg3[%c0_3, %c0_4] : memref<8x8xf32, #tpu.memory_space<vmem>>, vector<8x8xf32>
    %3 = arith.addf %0, %1 : vector<8x16xf32>
    %c0_5 = arith.constant 0 : index
    %c0_6 = arith.constant 0 : index
    %4 = vector.load %arg4[%c0_5, %c0_6] : memref<16x32xf32, #tpu.memory_space<vmem>>, vector<16x32xf32>
    %cst = arith.constant dense<0.000000e+00> : vector<8x32xf32>
    %5 = tpu.matmul %0, %4, %cst {dimension_numbers = #tpu.dot_dimension_numbers<[1], [0], [0], [1], [0, 0, 1, 1], [], []>} : vector<8x16xf32>, vector<16x32xf32>, vector<8x32xf32> -> vector<8x32xf32>
    %c0_7 = arith.constant 0 : index
    %c0_8 = arith.constant 0 : index
    %6 = vector.load %arg5[%c0_7, %c0_8] : memref<16x32xf32, #tpu.memory_space<vmem>>, vector<16x32xf32>
    %cst_9 = arith.constant dense<0.000000e+00> : vector<8x32xf32>
    %7 = tpu.matmul %1, %6, %cst_9 {dimension_numbers = #tpu.dot_dimension_numbers<[1], [0], [0], [1], [0, 0, 1, 1], [], []>} : vector<8x16xf32>, vector<16x32xf32>, vector<8x32xf32> -> vector<8x32xf32>
    %8 = arith.addf %5, %7 : vector<8x32xf32>
    %c0_10 = arith.constant 0 : index
    %c0_11 = arith.constant 0 : index
    %9 = vector.load %arg6[%c0_10, %c0_11] : memref<1x32xf32, #tpu.memory_space<vmem>>, vector<1x32xf32>
    %10 = vector.broadcast %9 : vector<1x32xf32> to vector<8x32xf32>
    %11 = arith.addf %8, %10 : vector<8x32xf32>
    %cst_12 = arith.constant 0.000000e+00 : f32
    %12 = vector.broadcast %cst_12 : f32 to vector<8x32xf32>
    %13 = arith.maximumf %11, %12 : vector<8x32xf32>
    %c0_13 = arith.constant 0 : index
    %c0_14 = arith.constant 0 : index
    %14 = vector.load %arg7[%c0_13, %c0_14] : memref<1x32xf32, #tpu.memory_space<vmem>>, vector<1x32xf32>
    %15 = vector.broadcast %14 : vector<1x32xf32> to vector<8x32xf32>
    %16 = arith.mulf %13, %15 : vector<8x32xf32>
    %cst_15 = arith.constant dense<0.000000e+00> : vector<8xf32>
    %17 = vector.multi_reduction <add>, %16, %cst_15 [1] : vector<8x32xf32> to vector<8xf32>
    %18 = vector.shape_cast %17 : vector<8xf32> to vector<8x1xf32>
    %c0_16 = arith.constant 0 : index
    %c0_17 = arith.constant 0 : index
    %19 = vector.load %arg8[%c0_16, %c0_17] : memref<1x1xf32, #tpu.memory_space<vmem>>, vector<1x1xf32>
    %20 = vector.broadcast %19 : vector<1x1xf32> to vector<8x1xf32>
    %21 = arith.addf %18, %20 : vector<8x1xf32>
    %cst_18 = arith.constant 0.000000e+00 : f32
    %22 = vector.broadcast %cst_18 : f32 to vector<8x1xf32>
    %23 = arith.subf %22, %21 : vector<8x1xf32>
    %24 = math.exp %23 : vector<8x1xf32>
    %cst_19 = arith.constant 1.000000e+00 : f32
    %25 = vector.broadcast %cst_19 : f32 to vector<8x1xf32>
    %26 = arith.addf %25, %24 : vector<8x1xf32>
    %cst_20 = arith.constant 1.000000e+00 : f32
    %27 = vector.broadcast %cst_20 : f32 to vector<8x1xf32>
    %28 = arith.divf %27, %26 : vector<8x1xf32>
    %c0_21 = arith.constant 0 : index
    %c0_22 = arith.constant 0 : index
    %29 = vector.load %arg15[%c0_21, %c0_22] : memref<8x1xf32, #tpu.memory_space<vmem>>, vector<8x1xf32>
    tpu.vector_store %arg15[%c0_21, %c0_22], %28 {strides = array<i32>} : memref<8x1xf32, #tpu.memory_space<vmem>>, vector<8x1xf32>,
    %c0_23 = arith.constant 0 : index
    %c0_24 = arith.constant 0 : index
    %30 = vector.load %arg9[%c0_23, %c0_24] : memref<16x8xf32, #tpu.memory_space<vmem>>, vector<16x8xf32>
    %cst_25 = arith.constant dense<0.000000e+00> : vector<8x8xf32>
    %31 = tpu.matmul %3, %30, %cst_25 {dimension_numbers = #tpu.dot_dimension_numbers<[1], [0], [0], [1], [0, 0, 1, 1], [], []>} : vector<8x16xf32>, vector<16x8xf32>, vector<8x8xf32> -> vector<8x8xf32>
    %c0_26 = arith.constant 0 : index
    %c0_27 = arith.constant 0 : index
    %32 = vector.load %arg10[%c0_26, %c0_27] : memref<1x8xf32, #tpu.memory_space<vmem>>, vector<1x8xf32>
    %33 = vector.broadcast %32 : vector<1x8xf32> to vector<8x8xf32>
    %34 = arith.addf %31, %33 : vector<8x8xf32>
    %c0_28 = arith.constant 0 : index
    %c0_29 = arith.constant 0 : index
    %35 = vector.load %arg11[%c0_28, %c0_29] : memref<16x8xf32, #tpu.memory_space<vmem>>, vector<16x8xf32>
    %cst_30 = arith.constant dense<0.000000e+00> : vector<8x8xf32>
    %36 = tpu.matmul %3, %35, %cst_30 {dimension_numbers = #tpu.dot_dimension_numbers<[1], [0], [0], [1], [0, 0, 1, 1], [], []>} : vector<8x16xf32>, vector<16x8xf32>, vector<8x8xf32> -> vector<8x8xf32>
    %c0_31 = arith.constant 0 : index
    %c0_32 = arith.constant 0 : index
    %37 = vector.load %arg12[%c0_31, %c0_32] : memref<1x8xf32, #tpu.memory_space<vmem>>, vector<1x8xf32>
    %38 = vector.broadcast %37 : vector<1x8xf32> to vector<8x8xf32>
    %39 = arith.addf %36, %38 : vector<8x8xf32>
    %40 = math.exp %34 : vector<8x8xf32>
    %41 = arith.mulf %40, %2 : vector<8x8xf32>
    %42 = arith.addf %41, %39 : vector<8x8xf32>
    %c0_33 = arith.constant 0 : index
    %c0_34 = arith.constant 0 : index
    %43 = vector.load %arg13[%c0_33, %c0_34] : memref<8x16xf32, #tpu.memory_space<vmem>>, vector<8x16xf32>
    %cst_35 = arith.constant dense<0.000000e+00> : vector<8x16xf32>
    %44 = tpu.matmul %42, %43, %cst_35 {dimension_numbers = #tpu.dot_dimension_numbers<[1], [0], [0], [1], [0, 0, 1, 1], [], []>} : vector<8x8xf32>, vector<8x16xf32>, vector<8x16xf32> -> vector<8x16xf32>
    %c0_36 = arith.constant 0 : index
    %c0_37 = arith.constant 0 : index
    %45 = vector.load %arg14[%c0_36, %c0_37] : memref<1x16xf32, #tpu.memory_space<vmem>>, vector<1x16xf32>
    %46 = vector.broadcast %45 : vector<1x16xf32> to vector<8x16xf32>
    %47 = arith.addf %44, %46 : vector<8x16xf32>
    %c0_38 = arith.constant 0 : index
    %c0_39 = arith.constant 0 : index
    %48 = vector.load %arg16[%c0_38, %c0_39] : memref<8x16xf32, #tpu.memory_space<vmem>>, vector<8x16xf32>
    tpu.vector_store %arg16[%c0_38, %c0_39], %47 {strides = array<i32>} : memref<8x16xf32, #tpu.memory_space<vmem>>, vector<8x16xf32>,
    return
  }
  func.func @transform_0(%arg0: i32) -> (i32, i32) {
    %c0_i32 = arith.constant 0 : i32
    %c0_i32_0 = arith.constant 0 : i32
    return %arg0, %c0_i32 : i32, i32
  }
  func.func @transform_1(%arg0: i32) -> (i32, i32) {
    %c0_i32 = arith.constant 0 : i32
    %c0_i32_0 = arith.constant 0 : i32
    return %arg0, %c0_i32 : i32, i32
  }
  func.func @transform_2(%arg0: i32) -> (i32, i32) {
    %c0_i32 = arith.constant 0 : i32
    %c0_i32_0 = arith.constant 0 : i32
    return %arg0, %c0_i32 : i32, i32
  }
  func.func @transform_3(%arg0: i32) -> (i32, i32) {
    %c0_i32 = arith.constant 0 : i32
    %c0_i32_0 = arith.constant 0 : i32
    %c0_i32_1 = arith.constant 0 : i32
    return %c0_i32, %c0_i32_0 : i32, i32
  }
  func.func @transform_4(%arg0: i32) -> (i32, i32) {
    %c0_i32 = arith.constant 0 : i32
    %c0_i32_0 = arith.constant 0 : i32
    %c0_i32_1 = arith.constant 0 : i32
    return %c0_i32, %c0_i32_0 : i32, i32
  }
  func.func @transform_5(%arg0: i32) -> (i32, i32) {
    %c0_i32 = arith.constant 0 : i32
    %c0_i32_0 = arith.constant 0 : i32
    %c0_i32_1 = arith.constant 0 : i32
    return %c0_i32, %c0_i32_0 : i32, i32
  }
  func.func @transform_6(%arg0: i32) -> (i32, i32) {
    %c0_i32 = arith.constant 0 : i32
    %c0_i32_0 = arith.constant 0 : i32
    %c0_i32_1 = arith.constant 0 : i32
    return %c0_i32, %c0_i32_0 : i32, i32
  }
  func.func @transform_7(%arg0: i32) -> (i32, i32) {
    %c0_i32 = arith.constant 0 : i32
    %c0_i32_0 = arith.constant 0 : i32
    %c0_i32_1 = arith.constant 0 : i32
    return %c0_i32, %c0_i32_0 : i32, i32
  }
  func.func @transform_8(%arg0: i32) -> (i32, i32) {
    %c0_i32 = arith.constant 0 : i32
    %c0_i32_0 = arith.constant 0 : i32
    %c0_i32_1 = arith.constant 0 : i32
    return %c0_i32, %c0_i32_0 : i32, i32
  }
  func.func @transform_9(%arg0: i32) -> (i32, i32) {
    %c0_i32 = arith.constant 0 : i32
    %c0_i32_0 = arith.constant 0 : i32
    %c0_i32_1 = arith.constant 0 : i32
    return %c0_i32, %c0_i32_0 : i32, i32
  }
  func.func @transform_10(%arg0: i32) -> (i32, i32) {
    %c0_i32 = arith.constant 0 : i32
    %c0_i32_0 = arith.constant 0 : i32
    %c0_i32_1 = arith.constant 0 : i32
    return %c0_i32, %c0_i32_0 : i32, i32
  }
  func.func @transform_11(%arg0: i32) -> (i32, i32) {
    %c0_i32 = arith.constant 0 : i32
    %c0_i32_0 = arith.constant 0 : i32
    %c0_i32_1 = arith.constant 0 : i32
    return %c0_i32, %c0_i32_0 : i32, i32
  }
  func.func @transform_12(%arg0: i32) -> (i32, i32) {
    %c0_i32 = arith.constant 0 : i32
    %c0_i32_0 = arith.constant 0 : i32
    %c0_i32_1 = arith.constant 0 : i32
    return %c0_i32, %c0_i32_0 : i32, i32
  }
  func.func @transform_13(%arg0: i32) -> (i32, i32) {
    %c0_i32 = arith.constant 0 : i32
    %c0_i32_0 = arith.constant 0 : i32
    %c0_i32_1 = arith.constant 0 : i32
    return %c0_i32, %c0_i32_0 : i32, i32
  }
  func.func @transform_14(%arg0: i32) -> (i32, i32) {
    %c0_i32 = arith.constant 0 : i32
    %c0_i32_0 = arith.constant 0 : i32
    return %arg0, %c0_i32 : i32, i32
  }
  func.func @transform_15(%arg0: i32) -> (i32, i32) {
    %c0_i32 = arith.constant 0 : i32
    %c0_i32_0 = arith.constant 0 : i32
    return %arg0, %c0_i32 : i32, i32
  }
}

</mosaic_0001>

<bundles_post_ra>
// kernel: tpu_custom_call.1
= control target key start
LH: loop header
LB: loop body
LE: loop exit
PB: predicated region body
PF: predicated region fallthrough
CT: control target
= control target key end

     0   :  { %s1278_s20 = smov 0   ;;  %s1363_s0 = inlined_call_operand.vmem [shape: f32[20,16], index: 0, kind: input, shape index: {}]   ;;  %s1364_s1 = inlined_call_operand.vmem [shape: f32[20,16], index: 1, kind: input, shape index: {}]   ;;  %s1365_s2 = inlined_call_operand.vmem [shape: f32[20,8], index: 2, kind: input, shape index: {}]   ;;  %s1366_s3 = inlined_call_operand.vmem [shape: f32[16,32], index: 3, kind: input, shape index: {}]   ;;  %s1367_s4 = inlined_call_operand.vmem [shape: f32[16,32], index: 4, kind: input, shape index: {}]   ;;  %s1368_s5 = inlined_call_operand.vmem [shape: f32[1,32], index: 5, kind: input, shape index: {}]   ;;  %s1369_s6 = inlined_call_operand.vmem [shape: f32[1,32], index: 6, kind: input, shape index: {}]   ;;  %s1370_s7 = inlined_call_operand.<no memory space> [shape: f32[1,1], index: 7, kind: input, shape index: {}]   ;;  %s1371_s8 = inlined_call_operand.vmem [shape: f32[16,8], index: 8, kind: input, shape index: {}]   ;;  %s1372_s9 = inlined_call_operand.vmem [shape: f32[1,8], index: 9, kind: input, shape index: {}]   ;;  %s1373_s10 = inlined_call_operand.vmem [shape: f32[16,8], index: 10, kind: input, shape index: {}]   ;;  %s1374_s11 = inlined_call_operand.vmem [shape: f32[1,8], index: 11, kind: input, shape index: {}]   ;;  %s1375_s12 = inlined_call_operand.vmem [shape: f32[8,16], index: 12, kind: input, shape index: {}]   ;;  %s1376_s13 = inlined_call_operand.vmem [shape: f32[1,16], index: 13, kind: input, shape index: {}]   ;;  %s1377_s14 = inlined_call_operand.vmem [shape: f32[20,1], index: 14, kind: output, shape index: {0}]   ;;  %s1378_s15 = inlined_call_operand.vmem [shape: f32[20,16], index: 15, kind: output, shape index: {1}]  }
   0x1   :  { %v21_v0 = vstv %s1370_s7 }
   0x2   :  { %22 = vst [vmem:[#allocation2] sm:$0x1] %v21_v0 }
   0x3 LB: > { %s1085_s21 = sadd.s32 4294967295, %s1190_s20   ;;  %p1089_p0 = scmp.ge.s32.totalorder %s1190_s20, 1  ;;  %s1190_s20 = sphi %s1278_s20, %s28_s20  }
   0x4   : > { %p459_p1 = scmp.lt.s32.totalorder %s1190_s20, 4 }
   0x6   : > { %p460_p2 = pnand %p1089_p0, %p459_p1 }
   0x7   : > { %v543_v1 = vld [vmem:[%s1367_s4] sm:$0xff] (!%p460_p2)  ;;  %v544_v2 = vld [vmem:[%s1367_s4 + $0x8] sm:$0xff] (!%p460_p2)  ;;  %v1192_v4 = vmov (!%p460_p2), 0.0|0.0   ;;  %p517_p3 = scmp.lt.s32.totalorder (!%p460_p2), %s1085_s21, 2  ;;  %vm1193_vm0 = vmmov (!%p460_p2), 0   ;;  %v1194_v8 = vmov (!%p460_p2), 0.0  }
   0x8   : > { %463 = sbr.rel (%p460_p2) target bundleno = 469 (0x1d5), region = 76  ;;  %v541_v3 = vld [vmem:[%s1366_s3] sm:$0xff] (!%p460_p2)  ;;  %1155 = vmatprep.subr.bf16.mxu0 (!%p460_p2), %v1192_v4  ;;  %v1156_v5 = vpack.c.bf16 (!%p460_p2), %v544_v2, %v543_v1  ;;  %1158 = vmatprep.subr.bf16.mxu1 (!%p460_p2), %v1192_v4  ;;  %v542_v6 = vld [vmem:[%s1366_s3 + $0x8] sm:$0xff] (!%p460_p2)  ;;  %vm545_vm1 = vcmask (!%p460_p2), 130048   ;;  %vm709_vm2 = vcmask (!%p460_p2), 261120   ;;  %vm902_vm3 = vcmask (!%p460_p2), 64512  }
   0x9   : > { %v1159_v7 = vpack.c.bf16 (!%p460_p2), %v542_v6, %v541_v3  ;;  %1126 = vmatprep.mubr.msk.f32.mxu0 (!%p460_p2), %vm1193_vm0, %v1194_v8  ;;  %1133 = vmatprep.mubr.msk.f32.mxu1 (!%p460_p2), %vm1193_vm0, %v1194_v8  ;;  %v729_v9 = vld [vmem:[%s1371_s8] sm:$0xff] (!%p460_p2)  ;;  %v730_v10 = vld [vmem:[%s1371_s8 + $0x8] sm:$0xff] (!%p460_p2)  ;;  %vm727_vm4 = vcmask (!%p460_p2), 7168  }
   0xa   : > { %1157 = vmatpush3.bf16.msra.mxu0 (!%p460_p2), %v1156_v5  ;;  %v811_v11 = vld [vmem:[%s1373_s10] sm:$0xff] (!%p460_p2)  ;;  %v812_v12 = vld [vmem:[%s1373_s10 + $0x8] sm:$0xff] (!%p460_p2)  ;;  %v1162_v13 = vpack.c.bf16 (!%p460_p2), %v730_v10, %v729_v9 }
   0xb   : > { %1160 = vmatpush3.bf16.msra.mxu1 (!%p460_p2), %v1159_v7  ;;  %1161 = vmatprep.subr.bf16.mxu0 (!%p460_p2), %v1192_v4  ;;  %v1165_v14 = vpack.c.bf16 (!%p460_p2), %v812_v12, %v811_v11  ;;  %v894_v18 = vld [vmem:[%s1375_s12] sm:$0xff] (!%p460_p2) }
   0xc   : > { %1164 = vmatprep.subr.bf16.mxu1 (!%p460_p2), %v1192_v4  ;;  %v1097_v21 = vld [vmem:[%s1368_s5] ss:$0 sm:$0xff] (!%p460_p2) }
   0xd   : > { %v1100_v24 = vld [vmem:[%s1372_s9] ss:$0 sm:$0xff] (!%p460_p2) }
   0xe   : > { %v1098_v30 = vld [vmem:[%s1369_s6] ss:$0 sm:$0xff] (!%p460_p2) }
   0xf   : > { %s1380_s21 = smov (!%p517_p3, %s1085_s21), 2  ;;  %v1102_v37 = vld [vmem:[%s1374_s11] ss:$0 sm:$0xff] }
  0x10   : > { %s1312_s7 = sshll.u32 %s1380_s21, 3  ;;  %v1099_v43 = vld [vmem:[#allocation2] ss:$0 sm:$0xff] }
  0x11   : > { %s524_s26 = scalar_lea.vmem %s1364_s1, %s1312_s7  ;;  %s520_s29 = scalar_lea.vmem %s1363_s0, %s1312_s7  ;;  %v1104_v51 = vld [vmem:[%s1376_s13] ss:$0 sm:$0xff] }
  0x12   : > { %v538_v15 = vld [vmem:[%s524_s26] sm:$0xff]  ;;  %s528_s26 = scalar_lea.vmem %s1365_s2, %s1312_s7  ;;  %s532_s30 = scalar_lea.vmem %s1377_s14, %s1312_s7 }
  0x13   : > { %1127 = vmatmul.mubr.msk.f32.vlgmr.msra.gmra.mrb[0].mxu0 %vm545_vm1, %v538_v15  ;;  %v537_v16 = vld [vmem:[%s520_s29] sm:$0xff]  ;;  %s536_s22 = scalar_lea.vmem %s1378_s15, %s1312_s7 }
  0x14   : > { %v540_v17 = vadd.f32 %v538_v15, %v537_v16  ;;  %1134 = vmatmul.mubr.msk.f32.vlgmr.msra.gmra.mrb[0].mxu1 %vm545_vm1, %v537_v16  ;;  %1163 = vmatpush3.bf16.msra.mxu0 %v1162_v13  ;;  %v539_v38 = vld [vmem:[%s528_s26] sm:$0xff] }
  0x15   : > { %1140 = vmatprep.mubr.msk.f32.mxu0 %vm1193_vm0, %v1194_v8  ;;  %1166 = vmatpush3.bf16.msra.mxu1 %v1165_v14 }
  0x16   : > { %1147 = vmatprep.mubr.msk.f32.mxu1 %vm1193_vm0, %v1194_v8  ;;  %1150 = vmatprep.subr.mxu0 %v1194_v8 }
  0x17   : > { %1141 = vmatmul.mubr.msk.f32.vlgmr.msra.gmra.mrb[2].mxu0 %vm545_vm1, %v540_v17 }
  0x18   : > { %1148 = vmatmul.mubr.msk.f32.vlgmr.msra.gmra.mrb[2].mxu1 %vm545_vm1, %v540_v17  ;;  %1152 = vmatprep.mubr.msk.f32.mxu0 %vm1193_vm0, %v1194_v8 }
  0x19   : > { %1151 = vmatpush3.msra.mxu0 %v894_v18 }
  0xe6   : > { %v615_v19 = vpop.f32.mrb[0].mxu0 }
  0xe7   : > { %v688_v20 = vpop.f32.mrb[0].mxu1  ;;  %v1128_v22 = vpop.f32.mrb[1].mxu0 }
  0xe8   : > { %v689_v23 = vadd.f32 %v688_v20, %v615_v19  ;;  %v1135_v25 = vpop.f32.mrb[1].mxu1 }
  0xea   : > { %v699_v26 = vadd.f32 %v1097_v21, %v689_v23  ;;  %v807_v27 = vpop.f32.mrb[2].mxu0 }
  0xeb   : > { %v808_v28 = vadd.f32 %v1100_v24, %v807_v27  ;;  %v1142_v29 = vpop.f32.mrb[3].mxu0  ;;  %v886_v31 = vpop.f32.mrb[2].mxu1 }
  0xec   : > { %v700_v32 = vmax.f32 %v699_v26, 0.0  ;;  %v1149_v33 = vpop.f32.mrb[3].mxu1  ;;  %v887_v39 = vadd.f32 %v1102_v37, %v886_v31 }
  0xed   : > { %v890_v34 = vmul.f32 1.442695, %v808_v28 }
  0xee   : > { %v708_v35 = vmul.f32 %v1098_v30, %v700_v32 }
  0xef   : > { %1178 = vpow2.f32 %v890_v34 }
  0xf0   : > { %v710_v36 = vsel %vm709_vm2, %v708_v35, 0.0 }
  0xf1   : > { %711 = vadd.xlane.f32.xlu0 %v710_v36 }
  0xf9   : > { %v1179_v40 = vpop.eup %1178 }
  0xfa   : > { %v892_v41 = vmul.f32 %v1179_v40, %v539_v38 }
  0xfc   : > { %v893_v42 = vadd.f32 %v892_v41, %v887_v39 }
  0xfe   : > { %1153 = vmatmul.mubr.msk.f32.vlgmr.msra.gmra.mrb[4].mxu0 %vm902_vm3, %v893_v42 }
 0x17e   : > { %v712_v44 = vpop.xlane.xlu0 %711 }
 0x17f   : > { %v720_v45 = vadd.f32 %v1099_v43, %v712_v44 }
 0x181   : > { %v721_v46 = vsub.f32 0.0, %v720_v45 }
 0x183   : > { %v722_v47 = vmul.f32 1.442695, %v721_v46 }
 0x185   : > { %1180 = vpow2.f32 %v722_v47 }
 0x18f   : > { %v1181_v48 = vpop.eup %1180 }
 0x190   : > { %v724_v49 = vadd.f32 1.0, %v1181_v48 }
 0x192   : > { %1182 = vrcp.f32 %v724_v49 }
 0x19c   : > { %v1183_v50 = vpop.eup %1182 }
 0x19d   : > { %728 = vst.msk [vmem:[%s532_s30] sm:$0xff] %vm727_vm4, %v1183_v50 }
 0x1d1   : > { %v972_v52 = vpop.f32.mrb[4].mxu0 }
 0x1d2   : > { %v973_v53 = vadd.f32 %v1104_v51, %v972_v52  ;;  %v1154_v54 = vpop.f32.mrb[5].mxu0 }
 0x1d4   : > { %976 = vst.msk [vmem:[%s536_s22] sm:$0xff] %vm545_vm1, %v973_v53 }
 0x1d5 PF: > { %s28_s20 = sadd.s32 1, %s1190_s20  }
 0x1d6   : > { %p25_p4 = scmp.ge.s32.totalorder %s28_s20, 5  }
 0x1d8   :  { %27 = sbr.rel (!%p25_p4) target bundleno = 3 (0x3), region = 124 }

</bundles_post_ra>
